<compile_context>
chip_gen: v5e
topology: v5e:2x2
jax: 0.10.0
libtpu: 0.0.40
codegen_flags: <defaults>
</compile_context>

<pallas_src>
import functools
import math

import jax
import jax.numpy as jnp
from jax.experimental import pallas as pl
from jax.experimental.pallas import tpu as pltpu

SCALE_MIN = 1e-4
SCALE_MAX = 1.0

# Budget for the double-buffered pipelined blocks (x in + out) plus the
# resident fused weight/bias.  48 MiB limit stays inside v7x's 64 MiB physical
# VMEM with headroom and lifts v5e's 16 MiB scoped default.
_PIPELINE_VMEM_BUDGET = 32 * 1024 * 1024
_VMEM_LIMIT_BYTES = 48 * 1024 * 1024


def _round_up(n, m):
    return ((n + m - 1) // m) * m


def _choose_batch_tile(batch, in_features, out_features, x_itemsize, out_itemsize):
    """Rows per grid step, derived from a total VMEM budget (not x-only)."""
    # Bytes of VMEM per batch row: double-buffered x block + double-buffered out block.
    per_row = 2 * in_features * x_itemsize + 2 * out_features * out_itemsize
    # Resident fused W / b (budgeted as double-buffered to stay conservative;
    # their index_map is constant so they are DMA'd once).
    resident = 2 * (in_features * out_features * x_itemsize + out_features * 4)
    avail = max(_PIPELINE_VMEM_BUDGET - resident, 8 * per_row)
    rows = max(8, (avail // per_row // 8) * 8)

    tb = min(_round_up(batch, 8), rows)
    if batch > 8:
        # Keep at least 2 grid steps for larger batches: v7x shards the
        # "parallel" batch axis over its 2 TensorCores, and the pipeline needs
        # something to overlap.
        tb = min(tb, max(8, _round_up(-(-batch // 2), 8)))
    return tb


def _gaussian_head_kernel(x_ref, w_ref, b_ref, out_ref, *,
                          action_size, scale_min, scale_max):
    # Single fused MXU matmul for both heads: [TB, D] @ [D, 2A] -> [TB, 2A],
    # f32 accumulation regardless of the streaming dtype.
    y = jnp.dot(x_ref[...], w_ref[...], preferred_element_type=jnp.float32)
    y = y + b_ref[...].astype(jnp.float32)

    def softplus_clip(v):
        if scale_max <= 20.0:
            # Large-input shortcut is dead: softplus(v) > scale_max long before
            # v=20, and exp overflow to +inf clamps exactly to scale_max.
            sp = jnp.log1p(jnp.exp(v))
        else:
            sp = jnp.where(v > 20.0, v, jnp.log1p(jnp.exp(v)))
        return jnp.clip(sp, scale_min, scale_max)

    if action_size % 128 == 0:
        # Lane-aligned split: each half is a whole number of vregs, so stores
        # are full-width and each transcendental only runs on its own half.
        out_ref[:, :action_size] = jnp.tanh(y[:, :action_size]).astype(out_ref.dtype)
        out_ref[:, action_size:] = softplus_clip(y[:, action_size:]).astype(out_ref.dtype)
    else:
        # A << 128: per-lane select (no intra-vreg shuffling); padding each
        # head to 128 lanes would only add output write traffic here.
        col = jax.lax.broadcasted_iota(jnp.int32, y.shape, dimension=1)
        is_loc = col < action_size
        out_ref[...] = jnp.where(is_loc, jnp.tanh(y), softplus_clip(y)).astype(out_ref.dtype)


@functools.partial(jax.jit,
                   static_argnames=("scale_min", "scale_max", "stream_bf16"))
def gaussian_policy_head(x, w_loc, b_loc, w_scale, b_scale, *,
                         scale_min=SCALE_MIN, scale_max=SCALE_MAX,
                         stream_bf16=True):
    """x: [B, D]; w_*: [D, A]; b_*: [1, A]  ->  (loc [B, A], scale [B, A])."""
    B, D = x.shape
    A = w_loc.shape[1]
    out_cols = 2 * A

    io_dtype = jnp.bfloat16 if stream_bf16 else jnp.float32
    x_in = x.astype(io_dtype)
    # Fuse the two heads: one matmul, one weight DMA, one output slab.
    w = jnp.concatenate([w_loc, w_scale], axis=1).astype(io_dtype)   # [D, 2A]
    b = jnp.concatenate([b_loc, b_scale], axis=1).astype(jnp.float32)  # [1, 2A]

    tb = _choose_batch_tile(B, D, out_cols,
                            x_itemsize=jnp.dtype(io_dtype).itemsize,
                            out_itemsize=4)
    grid = (pl.cdiv(B, tb),)   # ragged last block handled by Pallas (no pad)

    kernel = functools.partial(_gaussian_head_kernel, action_size=A,
                               scale_min=float(scale_min),
                               scale_max=float(scale_max))

    out = pl.pallas_call(
        kernel,
        out_shape=jax.ShapeDtypeStruct((B, out_cols), jnp.float32),
        grid=grid,
        in_specs=[
            pl.BlockSpec((tb, D), lambda i: (i, 0)),          # x: tiled over batch
            pl.BlockSpec((D, out_cols), lambda i: (0, 0)),    # fused W: resident
            pl.BlockSpec((1, out_cols), lambda i: (0, 0)),    # fused b: resident
        ],
        out_specs=pl.BlockSpec((tb, out_cols), lambda i: (i, 0)),
        compiler_params=pltpu.CompilerParams(
            dimension_semantics=("parallel",),
            vmem_limit_bytes=_VMEM_LIMIT_BYTES),
    )(x_in, w, b)

    loc = out[:, :A]
    scale = out[:, A:]
    return loc, scale


def init_linear_params(key, in_features, out_features):
    """Deterministic init matching torch.nn.Linear default (uniform ±1/sqrt(in))."""
    k_w, k_b = jax.random.split(key)
    bound = 1.0 / math.sqrt(in_features)
    # Stored as [in, out] (transposed vs PyTorch's [out, in]) for the kernel matmul.
    w = jax.random.uniform(k_w, (in_features, out_features),
                           minval=-bound, maxval=bound, dtype=jnp.float32)
    b = jax.random.uniform(k_b, (1, out_features),
                           minval=-bound, maxval=bound, dtype=jnp.float32)
    return w, b


if __name__ == "__main__":
    key = jax.random.PRNGKey(0)
    k_x, k_loc, k_scale = jax.random.split(key, 3)

    batch = 2
    input_size = 32    # hidden features coming from the torso network
    action_size = 8

    x = jax.random.normal(k_x, (batch, input_size), dtype=jnp.float32)
    w_loc, b_loc = init_linear_params(k_loc, input_size, action_size)
    w_scale, b_scale = init_linear_params(k_scale, input_size, action_size)

    # Default (bf16-streaming) path.
    loc, scale = gaussian_policy_head(x, w_loc, b_loc, w_scale, b_scale)
    jax.block_until_ready((loc, scale))

    assert loc.shape == (batch, action_size)
    assert scale.shape == (batch, action_size)

    # Reference on the bf16-quantized operands the kernel actually consumed.
    xq = x.astype(jnp.bfloat16).astype(jnp.float32)
    wlq = w_loc.astype(jnp.bfloat16).astype(jnp.float32)
    wsq = w_scale.astype(jnp.bfloat16).astype(jnp.float32)
    loc_ref_q = jnp.tanh(xq @ wlq + b_loc)
    scale_ref_q = jnp.clip(jax.nn.softplus(xq @ wsq + b_scale), SCALE_MIN, SCALE_MAX)
    assert jnp.allclose(loc, loc_ref_q, atol=1e-4), "loc mismatch (bf16 path)"
    assert jnp.allclose(scale, scale_ref_q, atol=1e-4), "scale mismatch (bf16 path)"

    # Exact f32 reference (same math as the PyTorch module); bf16 path loosely,
    # f32-streaming path tightly.
    # TODO(synk): the torch.distributions.Normal wrapper is not a kernel
    # concern; downstream code consumes (loc, scale) directly.
    loc_ref = jnp.tanh(x @ w_loc + b_loc)
    scale_ref = jnp.clip(jax.nn.softplus(x @ w_scale + b_scale), SCALE_MIN, SCALE_MAX)
    assert jnp.allclose(loc, loc_ref, atol=5e-2), "loc mismatch vs f32 ref (bf16 path)"
    assert jnp.allclose(scale, scale_ref, atol=5e-2), "scale mismatch vs f32 ref (bf16 path)"

    loc32, scale32 = gaussian_policy_head(x, w_loc, b_loc, w_scale, b_scale,
                                          stream_bf16=False)
    jax.block_until_ready((loc32, scale32))
    assert jnp.allclose(loc32, loc_ref, atol=1e-5), "loc mismatch (f32 path)"
    assert jnp.allclose(scale32, scale_ref, atol=1e-5), "scale mismatch (f32 path)"

    print("KERNEL_OK")
</pallas_src>

<mosaic_0001>
module attributes {stable_mosaic.version = 11 : i64} {
  func.func @_gaussian_head_kernel(%arg0: i32, %arg1: memref<8x32xbf16, #tpu.memory_space<vmem>>, %arg2: memref<32x16xbf16, #tpu.memory_space<vmem>>, %arg3: memref<1x16xf32, #tpu.memory_space<vmem>>, %arg4: memref<8x16xf32, #tpu.memory_space<vmem>>) attributes {dimension_semantics = [#tpu.dimension_semantics<parallel>], iteration_bounds = array<i64: 1>, scalar_prefetch = 0 : i64, scratch_operands = 0 : i64, tpu.core_type = #tpu.core_type<tc>, window_params = [{transform_indices = @transform_0, window_bounds = array<i64: 8, 32>}, {pipeline_mode = #tpu.pipeline_mode<synchronous>, transform_indices = @transform_1, window_bounds = array<i64: 32, 16>}, {pipeline_mode = #tpu.pipeline_mode<synchronous>, transform_indices = @transform_2, window_bounds = array<i64: 1, 16>}, {transform_indices = @transform_3, window_bounds = array<i64: 8, 16>}]} {
    %c0 = arith.constant 0 : index
    %c0_0 = arith.constant 0 : index
    %0 = vector.load %arg1[%c0, %c0_0] : memref<8x32xbf16, #tpu.memory_space<vmem>>, vector<8x32xbf16>
    %c0_1 = arith.constant 0 : index
    %c0_2 = arith.constant 0 : index
    %1 = vector.load %arg2[%c0_1, %c0_2] : memref<32x16xbf16, #tpu.memory_space<vmem>>, vector<32x16xbf16>
    %cst = arith.constant dense<0.000000e+00> : vector<8x16xf32>
    %2 = tpu.matmul %0, %1, %cst {dimension_numbers = #tpu.dot_dimension_numbers<[1], [0], [0], [1], [0, 0, 1, 1], [], []>} : vector<8x32xbf16>, vector<32x16xbf16>, vector<8x16xf32> -> vector<8x16xf32>
    %c0_3 = arith.constant 0 : index
    %c0_4 = arith.constant 0 : index
    %3 = vector.load %arg3[%c0_3, %c0_4] : memref<1x16xf32, #tpu.memory_space<vmem>>, vector<1x16xf32>
    %4 = vector.broadcast %3 : vector<1x16xf32> to vector<8x16xf32>
    %5 = arith.addf %2, %4 : vector<8x16xf32>
    %6 = tpu.iota {dimensions = array<i32: 1>} : vector<8x16xi32>
    %c8_i32 = arith.constant 8 : i32
    %7 = vector.broadcast %c8_i32 : i32 to vector<8x16xi32>
    %8 = arith.cmpi slt, %6, %7 : vector<8x16xi32>
    %9 = math.tanh %5 : vector<8x16xf32>
    %10 = math.exp %5 : vector<8x16xf32>
    %11 = math.log1p %10 : vector<8x16xf32>
    %cst_5 = arith.constant 9.99999974E-5 : f32
    %cst_6 = arith.constant 1.000000e+00 : f32
    %12 = vector.broadcast %cst_5 : f32 to vector<8x16xf32>
    %13 = arith.maximumf %12, %11 : vector<8x16xf32>
    %14 = vector.broadcast %cst_6 : f32 to vector<8x16xf32>
    %15 = arith.minimumf %14, %13 : vector<8x16xf32>
    %16 = arith.select %8, %9, %15 : vector<8x16xi1>, vector<8x16xf32>
    %c0_7 = arith.constant 0 : index
    %c0_8 = arith.constant 0 : index
    %17 = vector.load %arg4[%c0_7, %c0_8] : memref<8x16xf32, #tpu.memory_space<vmem>>, vector<8x16xf32>
    tpu.vector_store %arg4[%c0_7, %c0_8], %16 {strides = array<i32>} : memref<8x16xf32, #tpu.memory_space<vmem>>, vector<8x16xf32>,
    return
  }
  func.func @transform_0(%arg0: i32) -> (i32, i32) {
    %c0_i32 = arith.constant 0 : i32
    %c0_i32_0 = arith.constant 0 : i32
    return %arg0, %c0_i32 : i32, i32
  }
  func.func @transform_1(%arg0: i32) -> (i32, i32) {
    %c0_i32 = arith.constant 0 : i32
    %c0_i32_0 = arith.constant 0 : i32
    %c0_i32_1 = arith.constant 0 : i32
    return %c0_i32, %c0_i32_0 : i32, i32
  }
  func.func @transform_2(%arg0: i32) -> (i32, i32) {
    %c0_i32 = arith.constant 0 : i32
    %c0_i32_0 = arith.constant 0 : i32
    %c0_i32_1 = arith.constant 0 : i32
    return %c0_i32, %c0_i32_0 : i32, i32
  }
  func.func @transform_3(%arg0: i32) -> (i32, i32) {
    %c0_i32 = arith.constant 0 : i32
    %c0_i32_0 = arith.constant 0 : i32
    return %arg0, %c0_i32 : i32, i32
  }
}

</mosaic_0001>

<bundles_post_ra>
// kernel: gaussian_policy_head.1
= control target key start
LH: loop header
LB: loop body
LE: loop exit
PB: predicated region body
PF: predicated region fallthrough
CT: control target
= control target key end

     0   :  { %vm51_vm0 = vcmask 261120   ;;  %v67_v15 = vlaneseq  ;;  %vm85_vm3 = vcmask 130048   ;;  %s190_s0 = inlined_call_operand.vmem [shape: bf16[2,32], index: 0, kind: input, shape index: {}]   ;;  %s191_s1 = inlined_call_operand.vmem [shape: bf16[32,16], index: 1, kind: input, shape index: {}]   ;;  %s192_s2 = inlined_call_operand.vmem [shape: f32[1,16], index: 2, kind: input, shape index: {}]   ;;  %s193_s3 = inlined_call_operand.vmem [shape: f32[2,16], index: 3, kind: output, shape index: {}]  }
   0x1   :  { %v138_v0 = vld [vmem:[%s191_s1 + $0x8] sm:$0xff]  ;;  %v15_v1 = vld [vmem:[%s190_s0] sm:$0x1]  ;;  %v16_v3 = vld [vmem:[%s190_s0 + $0x1] sm:$0x1] }
   0x2   :  { %v137_v2 = vld [vmem:[%s191_s1] sm:$0xff]  ;;  %60 = vmatpush.bf16.msra.mxu0 %v138_v0  ;;  %28 = vst [vmem:[#allocation1] ss:$9 sm:$0xff] %v15_v1  ;;  %v68_v19 = vand.u32 127, %v67_v15 }
   0x3   :  { %v17_v4 = vld [vmem:[%s190_s0 + $0x2] sm:$0x1]  ;;  %v18_v5 = vld [vmem:[%s190_s0 + $0x3] sm:$0x1]  ;;  %31 = vst [vmem:[#allocation1 + $0x1] ss:$9 sm:$0xff] %v16_v3 }
   0x4   :  { %34 = vst [vmem:[#allocation1 + $0x2] ss:$9 sm:$0xff] %v17_v4  ;;  %v139_v7 = vld [vmem:[%s192_s2] ss:$0 sm:$0xff]  ;;  %vm69_vm2 = vcmp.lt.s32.totalorder %v68_v19, 8 }
   0x5   :  { %37 = vst [vmem:[#allocation1 + $0x3] ss:$9 sm:$0xff] %v18_v5 }
   0x6   :  { %61 = vmatpush.bf16.msra.mxu0 %v137_v2 }
   0xc   :  { %v38_v6 = vld [vmem:[#allocation1] sm:$0xff] }
   0xd   :  { %136 = vmatmul.msk.bf16.vlgmr.msra.gmra.mxu0 %vm51_vm0, %v38_v6 }
  0x8a   :  { %v63_v8 = vpop.f32.mrf.mxu0 }
  0x8b   :  { %v64_v9 = vadd.f32 %v139_v7, %v63_v8 }
  0x8d   :  { %v71_v10 = vmul.f32 1.442695, %v64_v9 }
  0x8f   :  { %140 = vpow2.f32 %v71_v10 }
  0x92   :  { %v65_v11 = vpop.f32.mrf.mxu0 }
  0x95   :  { %v141_v12 = vpop.eup %140 }
  0x96   :  { %v73_v13 = vadd.f32 1.0, %v141_v12  ;;  %v76_v14 = vmul.f32 -0.5, %v141_v12  ;;  %v79_v17 = vand.u32 2147483647, %v141_v12 }
  0x98   :  { %142 = vlog2.f32 %v73_v13  ;;  %v77_v16 = vadd.f32 1.0, %v76_v14  ;;  %vm80_vm1 = vcmp.lt.f32.partialorder %v79_v17, 0.0004427343 }
  0x99   :  { %144 = vtanh.f32 %v64_v9 }
  0x9a   :  { %v78_v21 = vmul.f32 %v141_v12, %v77_v16 }
  0x9e   :  { %v143_v18 = vpop.eup %142 }
  0x9f   :  { %v75_v20 = vmul.f32 0.6931472, %v143_v18  ;;  %v145_v25 = vpop.eup %144 }
  0xa1   :  { %v81_v22 = vsel %vm80_vm1, %v78_v21, %v75_v20 }
  0xa2   :  { %v82_v23 = vmax.f32 %v81_v22, 0.0001 }
  0xa4   :  { %v83_v24 = vmin.f32 %v82_v23, 1.0 }
  0xa6   :  { %v84_v26 = vsel %vm69_vm2, %v145_v25, %v83_v24 }
  0xa7   :  { %86 = vst.msk [vmem:[#allocation2] sm:$0xff] %vm85_vm3, %v84_v26 }
  0xae   :  { %v105_v27 = vld [vmem:[#allocation2] sm:$0x3] }
  0xaf   :  { %106 = vst [vmem:[%s193_s3] sm:$0x3] %v105_v27 }

</bundles_post_ra>
